<compile_context>
chip_gen: v6e
topology: v6e:2x2x1
jax: 0.10.0
libtpu: 0.0.40
codegen_flags: <defaults>
</compile_context>

<pallas_src>
import functools

import jax
import jax.numpy as jnp
from jax import lax
from jax.experimental import pallas as pl
from jax.experimental.pallas import tpu as pltpu

_LANE = 128


def _pool_sum_kernel(x_ref, o_ref, acc_ref, *, true_s, tile_s, tiles_per_split,
                     chunk_w, n_chunks, unroll):
    """Streams (1, C, tile_s) tiles of one sample and accumulates lane-parallel partial
    sums into a (C, chunk_w) f32 scratch; writes the per-(split, sample) spatial sum
    (1, 1, 1, C) on the last spatial step of the split."""
    p = pl.program_id(0)          # spatial split (parallel)
    k = pl.program_id(2)          # spatial tile within the split (reduction, innermost)

    @pl.when(k == 0)
    def _init():
        acc_ref[...] = jnp.zeros_like(acc_ref)

    # Unclamped global spatial-tile index and number of valid lanes in this tile.
    g = p * tiles_per_split + k
    remaining = true_s - g * tile_s        # may be <= 0 for clamped/duplicated tail tiles

    c = acc_ref.shape[0]

    def accumulate(masked):
        if masked:
            lane = lax.broadcasted_iota(jnp.int32, (c, chunk_w), 1)

        def body(j, carry):
            off = pl.multiple_of(j * chunk_w, chunk_w)
            chunk = x_ref[0, :, pl.ds(off, chunk_w)].astype(jnp.float32)   # (C, chunk_w)
            if masked:
                # Zero lanes beyond the true spatial extent (jnp.where so undefined VMEM
                # contents -- even NaN/Inf -- cannot corrupt the sum).
                chunk = jnp.where(lane < (remaining - off), chunk, 0.0)
            acc_ref[...] += chunk          # pure element-wise VPU add, no XLU in hot loop
            return carry

        lax.fori_loop(0, n_chunks, body, 0, unroll=unroll)

    @pl.when(remaining >= tile_s)          # interior tile: no masking needed
    def _full():
        accumulate(False)

    @pl.when(remaining < tile_s)           # ragged / out-of-range tile: masked
    def _partial():
        accumulate(True)

    @pl.when(k == tiles_per_split - 1)
    def _finalize():
        # Single cross-lane reduction per (split, sample).
        o_ref[...] = jnp.sum(acc_ref[...], axis=-1).reshape(o_ref.shape)


def _mlp_kernel(psum_ref, w1_ref, b1_ref, w2_ref, b2_ref, o_ref, *, inv_s):
    """pooled = mean over S; out = sigmoid(pooled + Linear2(LeakyReLU(Linear1(pooled))))."""
    pooled = jnp.sum(psum_ref[...], axis=0) * inv_s                        # (N, C) f32
    h = jnp.dot(pooled, w1_ref[...], preferred_element_type=jnp.float32) + b1_ref[...]
    h = jnp.where(h >= 0.0, h, 0.2 * h)                                    # LeakyReLU(0.2)
    y = jnp.dot(h, w2_ref[...], preferred_element_type=jnp.float32) + b2_ref[...]
    o_ref[...] = jax.nn.sigmoid(pooled + y).astype(o_ref.dtype)


def _vmem_capacity_bytes():
    try:
        return int(pltpu.get_tpu_info().vmem_capacity_bytes)
    except Exception:
        return 64 * 1024 * 1024   # assume the smallest (v7x per-TensorCore) if unknown


def _choose_tile_s(C, S, itemsize, chunk_w):
    """Near-equal, chunk-aligned spatial tiles sized so one streamed x block is a few MiB:
    big enough to amortize the ~0.35us per-grid-step overhead, small enough that the
    double-buffered stream fits v7x's 64 MiB VMEM (16 MiB/buffer on v5e/v6e)."""
    vmem_cap = _vmem_capacity_bytes()
    per_buf = (16 << 20) if vmem_cap >= (96 << 20) else (8 << 20)
    bytes_per_lane = C * itemsize
    max_tile = max(chunk_w, (per_buf // bytes_per_lane) // chunk_w * chunk_w)
    n_tiles = pl.cdiv(S, max_tile)
    return pl.cdiv(pl.cdiv(S, n_tiles), chunk_w) * chunk_w


def attention_block(x, w1, b1, w2, b2, *, tile_s=None, n_split=None):
    """x: (N, C, D, H, W). Weights use PyTorch nn.Linear convention: w (out, in), b (out,).
    Returns (N, C) f32, matching AttentionBlock.forward."""
    N, C, D, H, W = x.shape
    S = D * H * W
    itemsize = jnp.dtype(x.dtype).itemsize
    x_flat = x.reshape(N, C, S)                 # pure reshape -- no HBM copy, no padding

    chunk_w = 512                               # lane width of the VPU accumulator
    if tile_s is None:
        tile_s = _choose_tile_s(C, S, itemsize, chunk_w)
    else:
        tile_s = max(_LANE, pl.cdiv(int(tile_s), _LANE) * _LANE)
        for cand in (512, 384, 256, 128):
            if tile_s % cand == 0:
                chunk_w = cand
                break
    n_chunks = tile_s // chunk_w
    unroll = True if n_chunks <= 8 else 8

    num_s_tiles = pl.cdiv(S, tile_s)
    if n_split is None:
        # v7x has 2 TensorCores per chip: for N == 1 split the spatial axis so both stream.
        n_split = 2 if (N == 1 and num_s_tiles >= 2) else 1
    n_split = max(1, min(int(n_split), num_s_tiles))
    tiles_per_split = pl.cdiv(num_s_tiles, n_split)

    if n_split * tiles_per_split == num_s_tiles:
        def x_index_map(p, i, k):
            return (i, 0, p * tiles_per_split + k)
    else:
        last_blk = num_s_tiles - 1

        def x_index_map(p, i, k):
            # Clamp duplicated tail tiles of the last split; they are fully masked inside
            # the kernel (remaining <= 0) so they contribute exactly zero.
            return (i, 0, jnp.minimum(p * tiles_per_split + k, last_blk))

    block_bytes = C * tile_s * itemsize
    vmem_limit = 2 * block_bytes + C * chunk_w * 4 + (4 << 20)
    vmem_limit = max(vmem_limit, 16 << 20)
    vmem_limit = min(vmem_limit,
                     (48 << 20) if _vmem_capacity_bytes() < (96 << 20) else (64 << 20))

    pool_cost = pl.CostEstimate(
        flops=int(N * C * S),
        transcendentals=0,
        bytes_accessed=int(itemsize * N * C * S + 4 * n_split * N * C),
    )

    pool_kernel = functools.partial(
        _pool_sum_kernel, true_s=S, tile_s=tile_s, tiles_per_split=tiles_per_split,
        chunk_w=chunk_w, n_chunks=n_chunks, unroll=unroll)

    partial_sums = pl.pallas_call(
        pool_kernel,
        out_shape=jax.ShapeDtypeStruct((n_split, N, 1, C), jnp.float32),
        grid_spec=pltpu.PrefetchScalarGridSpec(
            num_scalar_prefetch=0,
            grid=(n_split, N, tiles_per_split),
            in_specs=[pl.BlockSpec((1, C, tile_s), x_index_map)],
            out_specs=pl.BlockSpec((1, 1, 1, C), lambda p, i, k: (p, i, 0, 0)),
            scratch_shapes=[pltpu.VMEM((C, chunk_w), jnp.float32)],
        ),
        compiler_params=pltpu.CompilerParams(
            dimension_semantics=("parallel", "parallel", "arbitrary"),
            vmem_limit_bytes=int(vmem_limit),
        ),
        cost_estimate=pool_cost,
    )(x_flat)

    # Tiny MLP tail in its own single-shot Pallas call (one batched matmul per layer),
    # so the weights never occupy VMEM during the streaming reduction above.
    w1_t = w1.T                    # (C, 2C)
    w2_t = w2.T                    # (2C, C)
    b1_r = b1.reshape(1, -1)       # (1, 2C)
    b2_r = b2.reshape(1, -1)       # (1, C)

    out = pl.pallas_call(
        functools.partial(_mlp_kernel, inv_s=1.0 / float(S)),
        out_shape=jax.ShapeDtypeStruct((N, C), jnp.float32),
    )(partial_sums.reshape(n_split, N, C), w1_t, b1_r, w2_t, b2_r)
    return out


def reference(x, w1, b1, w2, b2):
    """Pure-JAX reference mirroring the PyTorch forward."""
    pooled = jnp.mean(x, axis=(2, 3, 4))                 # (N, C)
    h = pooled @ w1.T + b1
    h = jnp.where(h >= 0, h, 0.2 * h)
    y = h @ w2.T + b2
    return jax.nn.sigmoid(pooled + y)


if __name__ == "__main__":
    key = jax.random.PRNGKey(0)
    kx, k1, k2, k3, k4 = jax.random.split(key, 5)

    N, C = 2, 8
    feature_size = C

    # PyTorch Linear shapes: weight (out, in), bias (out,).
    w1 = jax.random.normal(k1, (2 * feature_size, feature_size), dtype=jnp.float32) * 0.1
    b1 = jax.random.normal(k2, (2 * feature_size,), dtype=jnp.float32) * 0.1
    w2 = jax.random.normal(k3, (feature_size, 2 * feature_size), dtype=jnp.float32) * 0.1
    b2 = jax.random.normal(k4, (feature_size,), dtype=jnp.float32) * 0.1

    def check(xx, name, **kw):
        out = jax.block_until_ready(attention_block(xx, w1, b1, w2, b2, **kw))
        ref = reference(xx, w1, b1, w2, b2)
        assert out.shape == ref.shape, f"{name}: shape {out.shape} vs {ref.shape}"
        assert jnp.allclose(out, ref, atol=1e-5, rtol=1e-5), f"mismatch vs reference ({name})"

    # Base case: S = 4*4*4 = 64 (single partial tile, masked tail, no host padding).
    x = jax.random.normal(kx, (N, C, 4, 4, 4), dtype=jnp.float32)
    check(x, "base")

    # Ragged spatial extent: S = 125 (not a multiple of 128).
    x2 = jax.random.normal(kx, (N, C, 5, 5, 5), dtype=jnp.float32)
    check(x2, "ragged S")

    # Multi-tile streaming with a ragged last tile: S = 9*8*8 = 576, tile_s = 128.
    x3 = jax.random.normal(kx, (N, C, 9, 8, 8), dtype=jnp.float32)
    check(x3, "multi-tile", tile_s=128)

    # N = 1 with an odd tile count: exercises the automatic 2-way spatial split across
    # TensorCores (partial sums + clamped/fully-masked duplicate tail tile).
    x4 = jax.random.normal(kx, (1, C, 5, 8, 8), dtype=jnp.float32)   # S = 320 -> 3 tiles
    check(x4, "split N=1", tile_s=128)

    # Explicit 2-way spatial split with N = 2 as well.
    check(x3, "split N=2", tile_s=128, n_split=2)

    print("KERNEL_OK")
</pallas_src>

<mosaic_0001>
module attributes {stable_mosaic.version = 11 : i64} {
  func.func @_pool_sum_kernel(%arg0: i32, %arg1: i32, %arg2: i32, %arg3: memref<1x8x512xf32, #tpu.memory_space<vmem>>, %arg4: memref<1x1x1x8xf32, #tpu.memory_space<vmem>>, %arg5: memref<8x512xf32, #tpu.memory_space<vmem>>) attributes {dimension_semantics = [#tpu.dimension_semantics<parallel>, #tpu.dimension_semantics<parallel>, #tpu.dimension_semantics<arbitrary>], iteration_bounds = array<i64: 1, 2, 1>, scalar_prefetch = 0 : i64, scratch_operands = 1 : i64, tpu.core_type = #tpu.core_type<tc>, window_params = [{transform_indices = @transform_0, window_bounds = array<i64: 1, 8, 512>}, {transform_indices = @transform_1, window_bounds = array<i64: 1, 1, 1, 8>}]} {
    %c0_i32 = arith.constant 0 : i32
    %0 = arith.cmpi eq, %arg2, %c0_i32 : i32
    %1 = arith.extui %0 : i1 to i32
    %c0_i32_0 = arith.constant 0 : i32
    %2 = arith.cmpi ne, %1, %c0_i32_0 : i32
    scf.if %2 {
      %cst = arith.constant 0.000000e+00 : f32
      %16 = vector.broadcast %cst : f32 to vector<8x512xf32>
      %c0 = arith.constant 0 : index
      %c0_7 = arith.constant 0 : index
      %17 = vector.load %arg5[%c0, %c0_7] : memref<8x512xf32, #tpu.memory_space<vmem>>, vector<8x512xf32>
      tpu.vector_store %arg5[%c0, %c0_7], %16 {strides = array<i32>} : memref<8x512xf32, #tpu.memory_space<vmem>>, vector<8x512xf32>,
    } else {
    }
    %c1_i32 = arith.constant 1 : i32
    %3 = arith.muli %arg0, %c1_i32 : i32
    %4 = arith.addi %3, %arg2 : i32
    %c512_i32 = arith.constant 512 : i32
    %5 = arith.muli %4, %c512_i32 : i32
    %c64_i32 = arith.constant 64 : i32
    %6 = arith.subi %c64_i32, %5 : i32
    %c512_i32_1 = arith.constant 512 : i32
    %7 = arith.cmpi sge, %6, %c512_i32_1 : i32
    %8 = arith.extui %7 : i1 to i32
    %c0_i32_2 = arith.constant 0 : i32
    %9 = arith.cmpi ne, %8, %c0_i32_2 : i32
    scf.if %9 {
      %c0_i32_7 = arith.constant 0 : i32
      %c512_i32_8 = arith.constant 512 : i32
      %16 = arith.muli %c0_i32_7, %c512_i32_8 : i32
      %17 = tpu.assume_multiple %16, 512 : i32
      %c0 = arith.constant 0 : index
      %c0_9 = arith.constant 0 : index
      %18 = arith.index_cast %17 : i32 to index
      %19 = vector.load %arg3[%c0, %c0_9, %18] : memref<1x8x512xf32, #tpu.memory_space<vmem>>, vector<1x8x512xf32>
      %20 = vector.shape_cast %19 : vector<1x8x512xf32> to vector<8x512xf32>
      %c0_10 = arith.constant 0 : index
      %c0_11 = arith.constant 0 : index
      %21 = vector.load %arg5[%c0_10, %c0_11] : memref<8x512xf32, #tpu.memory_space<vmem>>, vector<8x512xf32>
      %22 = arith.addf %21, %20 : vector<8x512xf32>
      %c0_12 = arith.constant 0 : index
      %c0_13 = arith.constant 0 : index
      %23 = vector.load %arg5[%c0_12, %c0_13] : memref<8x512xf32, #tpu.memory_space<vmem>>, vector<8x512xf32>
      tpu.vector_store %arg5[%c0_12, %c0_13], %22 {strides = array<i32>} : memref<8x512xf32, #tpu.memory_space<vmem>>, vector<8x512xf32>,
      %c1_i32_14 = arith.constant 1 : i32
    } else {
    }
    %c512_i32_3 = arith.constant 512 : i32
    %10 = arith.cmpi slt, %6, %c512_i32_3 : i32
    %11 = arith.extui %10 : i1 to i32
    %c0_i32_4 = arith.constant 0 : i32
    %12 = arith.cmpi ne, %11, %c0_i32_4 : i32
    scf.if %12 {
      %16 = tpu.iota {dimensions = array<i32: 1>} : vector<8x512xi32>
      %c0_i32_7 = arith.constant 0 : i32
      %c512_i32_8 = arith.constant 512 : i32
      %17 = arith.muli %c0_i32_7, %c512_i32_8 : i32
      %18 = tpu.assume_multiple %17, 512 : i32
      %c0 = arith.constant 0 : index
      %c0_9 = arith.constant 0 : index
      %19 = arith.index_cast %18 : i32 to index
      %20 = vector.load %arg3[%c0, %c0_9, %19] : memref<1x8x512xf32, #tpu.memory_space<vmem>>, vector<1x8x512xf32>
      %21 = vector.shape_cast %20 : vector<1x8x512xf32> to vector<8x512xf32>
      %22 = arith.subi %6, %18 : i32
      %23 = vector.broadcast %22 : i32 to vector<8x512xi32>
      %24 = arith.cmpi slt, %16, %23 : vector<8x512xi32>
      %cst = arith.constant 0.000000e+00 : f32
      %25 = vector.broadcast %cst : f32 to vector<8x512xf32>
      %26 = arith.select %24, %21, %25 : vector<8x512xi1>, vector<8x512xf32>
      %c0_10 = arith.constant 0 : index
      %c0_11 = arith.constant 0 : index
      %27 = vector.load %arg5[%c0_10, %c0_11] : memref<8x512xf32, #tpu.memory_space<vmem>>, vector<8x512xf32>
      %28 = arith.addf %27, %26 : vector<8x512xf32>
      %c0_12 = arith.constant 0 : index
      %c0_13 = arith.constant 0 : index
      %29 = vector.load %arg5[%c0_12, %c0_13] : memref<8x512xf32, #tpu.memory_space<vmem>>, vector<8x512xf32>
      tpu.vector_store %arg5[%c0_12, %c0_13], %28 {strides = array<i32>} : memref<8x512xf32, #tpu.memory_space<vmem>>, vector<8x512xf32>,
      %c1_i32_14 = arith.constant 1 : i32
    } else {
    }
    %c0_i32_5 = arith.constant 0 : i32
    %13 = arith.cmpi eq, %arg2, %c0_i32_5 : i32
    %14 = arith.extui %13 : i1 to i32
    %c0_i32_6 = arith.constant 0 : i32
    %15 = arith.cmpi ne, %14, %c0_i32_6 : i32
    scf.if %15 {
      %c0 = arith.constant 0 : index
      %c0_7 = arith.constant 0 : index
      %16 = vector.load %arg5[%c0, %c0_7] : memref<8x512xf32, #tpu.memory_space<vmem>>, vector<8x512xf32>
      %cst = arith.constant dense<0.000000e+00> : vector<8xf32>
      %17 = vector.multi_reduction <add>, %16, %cst [1] : vector<8x512xf32> to vector<8xf32>
      %18 = vector.shape_cast %17 : vector<8xf32> to vector<1x1x1x8xf32>
      %c0_8 = arith.constant 0 : index
      %c0_9 = arith.constant 0 : index
      %c0_10 = arith.constant 0 : index
      %c0_11 = arith.constant 0 : index
      %19 = vector.load %arg4[%c0_8, %c0_9, %c0_10, %c0_11] : memref<1x1x1x8xf32, #tpu.memory_space<vmem>>, vector<1x1x1x8xf32>
      tpu.vector_store %arg4[%c0_8, %c0_9, %c0_10, %c0_11], %18 {strides = array<i32>} : memref<1x1x1x8xf32, #tpu.memory_space<vmem>>, vector<1x1x1x8xf32>,
    } else {
    }
    return
  }
  func.func @transform_0(%arg0: i32, %arg1: i32, %arg2: i32) -> (i32, i32, i32) {
    %c1_i32 = arith.constant 1 : i32
    %0 = arith.muli %arg0, %c1_i32 : i32
    %1 = arith.addi %0, %arg2 : i32
    %c0_i32 = arith.constant 0 : i32
    %c0_i32_0 = arith.constant 0 : i32
    return %arg1, %c0_i32, %1 : i32, i32, i32
  }
  func.func @transform_1(%arg0: i32, %arg1: i32, %arg2: i32) -> (i32, i32, i32, i32) {
    %c0_i32 = arith.constant 0 : i32
    %c0_i32_0 = arith.constant 0 : i32
    %c0_i32_1 = arith.constant 0 : i32
    return %arg0, %arg1, %c0_i32, %c0_i32_0 : i32, i32, i32, i32
  }
}

</mosaic_0001>

<bundles_post_ra>
// kernel: tpu_custom_call.1
= control target key start
LH: loop header
LB: loop body
LE: loop exit
PB: predicated region body
PF: predicated region fallthrough
CT: control target
= control target key end

     0   :  { %6 = vsyncpa [#allocation4], 0  ;;  %s653_s0 = inlined_call_operand.hbm [shape: f32[2,8,64], index: 0, kind: input, shape index: {}]   ;;  %s654_s1 = inlined_call_operand.hbm [shape: f32[1,2,1,8], index: 1, kind: output, shape index: {}]  }
   0x1   :  { %8 = vsyncpa [#allocation4 + $0x1], 0 }
   0x2   :  { %9 = vsyncpa [#allocation5], 0 }
   0x3   :  { %11 = vsyncpa [#allocation5 + $0x1], 0  ;;  %s535_s6 = smov 0   ;;  %s537_s7 = smov 0  }
   0x4   :  { %s539_s8 = smov 0   ;;  %s541_s9 = smov 0  }
   0x5   :  { %s543_s10 = smov 0   ;;  %s545_s11 = smov 0  }
   0x6 LB: > { %s352_s12 = sadd.s32 4294967295, %s521_s11   ;;  %s353_s13 = sadd.s32 4294967294, %s521_s11   ;;  %s521_s11 = sphi %s545_s11, %s17_s11   ;;  %s517_s10 = sphi %s543_s10, %s664_s10   ;;  %s513_s9 = sphi %s541_s9, %s663_s9   ;;  %s509_s8 = sphi %s539_s8, %s662_s8   ;;  %s505_s7 = sphi %s537_s7, %s661_s7   ;;  %s501_s6 = sphi %s535_s6, %s660_s6  }
   0x7   : > { %s32_s14 = sadd.s32 1, %s517_s10  ;;  %s47_s15 = sadd.s32 1, %s509_s8 }
   0x8   : > { %p34_p0 = scmp.ge.s32.totalorder %s32_s14, 2  ;;  %p54_p1 = scmp.ne.s32.totalorder %s509_s8, %s505_s7 }
   0x9   : > { %p55_p2 = scmp.eq.s32.totalorder %s521_s11, 0  ;;  %p60_p3 = scmp.ne.s32.totalorder %s505_s7, %s501_s6 }
   0xa   : > { %s666_s14 = smov (%p34_p0, %s32_s14), 0  ;;  %p61_p5 = scmp.eq.s32.totalorder %s352_s12, 0 }
   0xb   : > { %p56_p4 = por %p55_p2, %p54_p1  ;;  %s42_s16 = ssub.s32 %s517_s10, %s666_s14 }
   0xc   : > { %p86_p6 = scmp.eq.s32.totalorder %s352_s12, 1  ;;  %p45_p7 = scmp.eq.s32.totalorder %s42_s16, 0 }
   0xd   : > { %p578_p8 = por %p61_p5, %p60_p3  ;;  %p92_p10 = scmp.eq.s32.totalorder %s353_s13, 1 }
   0xe   : > { %p582_p9 = por %p86_p6, %p54_p1  ;;  %p655_p12 = scmp.ge.s32.totalorder %s521_s11, 2 }
   0xf   : > { %s587_s19 = scalar_select %p45_p7, %s509_s8, %s47_s15  }
  0x10   : > { %p589_p11 = por %p92_p10, %p60_p3  ;;  %108 = sbr.rel (%p655_p12) target bundleno = 39 (0x27), region = 16 }
  0x15   : > { %111 = sbr.rel (!%p56_p4) target bundleno = 39 (0x27), region = 20  ;;  %s112_s21 = sand.u32 (%p56_p4), 1, %s509_s8  }
  0x16   : > { %s356_s22 = sshll.u32 (%p56_p4), %s112_s21, 5  ;;  %s113_s23 = scalar_lea.sflag (%p56_p4), [#allocation4], %s112_s21 }
  0x17   : > { %s116_s24 = scalar_lea.vmem (%p56_p4), [#allocation3], %s356_s22 }
  0x1a   : > { %123 = vsyncadd %s113_s23, 384  ;;  %s357_s25 = sshll.u32 %s517_s10, 7  ;;  %s130_s26 = sshll.u32 %s116_s24, 4  ;;  %s131_s26 = int_to_ptr.vmem [resolvable:$true] %s130_s26 }
  0x1b   : > { %s127_s29 = scalar_lea.hbm %s653_s0, %s357_s25  ;;  %s429_s30 = scalar_lea.vmem %s131_s26, 128 }
  0x1c   : > { %p430_p13 = scmp.ne.s32.totalorder %s131_s26, %s429_s30  ;;  %s523_s2 = smov [#allocation3]  }
  0x1d   : > { %s431_s3 = sshll.u32 %s523_s2, 4  ;;  %s432_s3 = int_to_ptr.vmem [resolvable:$false] %s431_s3 }
  0x1e   : > { %s433_s4 = scalar_lea.vmem %s432_s3, 1024  ;;  %p434_p0 = scmp.lt.s32.totalorder %s131_s26, %s432_s3 }
  0x1f   : > { %p435_p1 = scmp.lt.s32.totalorder %s433_s4, %s429_s30 }
  0x21   : > { %p436_p2 = por %p435_p1, %p434_p0 }
  0x23   : > { %p437_p3 = pnand %p436_p2, %p430_p13 }
  0x25   : > { %440 = shalt.err (!%p437_p3)
}
  0x26   : > { %133 = dma.hbm_to_vmem [thread:$0]  %s127_s29, 128, %s131_s26, %s113_s23  }
  0x27 PF: > { %p358_p4 = scmp.ge.s32.totalorder %s521_s11, 1  ;;  %p135_p5 = scmp.lt.s32.totalorder %s521_s11, 3 }
  0x29   : > { %p136_p6 = pnand %p358_p4, %p135_p5 }
  0x2a   : > { %s604_s5 = sand.u32 (!%p136_p6), 1, %s505_s7  }
  0x2b   : > { %139 = sbr.rel (%p136_p6) target bundleno = 208 (0xd0), region = 24  ;;  %s359_s12 = sshll.u32 (!%p136_p6), %s604_s5, 5 }
  0x2c   : > { %s142_s13 = scalar_lea.sflag (!%p136_p6), [#allocation4], %s604_s5  ;;  %s145_s15 = scalar_lea.vmem (!%p136_p6), [#allocation3], %s359_s12 }
  0x30   : > { %492 = dma.done.wait (%p578_p8), %s142_s13, 512  }
  0x31   : > { %494 = vsyncadd (%p578_p8), %s142_s13, 4294966784  ;;  %v202_v0 = vlaneseq  ;;  %v207_v2 = vld [vmem:[%s145_s15] sm:$0xff]  ;;  %s360_s16 = sshll.u32 %s513_s9, 4  ;;  %s162_s21 = scalar_lea.vmem [#allocation6], %s604_s5  ;;  %vm253_vm1 = vcmask 57344  }
  0x32   : > { %s270_s22 = sshll.u32 %s162_s21, 4  ;;  %s268_s24 = scalar_lea.hbm %s654_s1, %s360_s16  ;;  %s271_s22 = int_to_ptr.vmem [resolvable:$true] %s270_s22 }
  0x33   : > { %v203_v1 = vand.u32 127, %v202_v0  ;;  %v249_v4 = vshrl.u32 %v202_v0, 7  ;;  %s256_s25 = scalar_lea.sflag [#allocation5], %s604_s5  ;;  %s441_s26 = scalar_lea.vmem %s271_s22, 16 }
  0x34   : > { %p442_p7 = scmp.ne.s32.totalorder %s271_s22, %s441_s26  ;;  %s524_s27 = smov [#allocation6]  }
  0x35   : > { %vm213_vm0 = vcmp.lt.s32.totalorder %v203_v1, 64  ;;  %v250_v5 = vsub.s32 %v203_v1, %v249_v4  ;;  %s445_s28 = sshll.u32 %s524_s27, 4  ;;  %s446_s28 = int_to_ptr.vmem [resolvable:$false] %s445_s28 }
  0x36   : > { %v217_v3 = vsel %vm213_vm0, %v207_v2, 0.0  ;;  %p443_p8 = pnand %p442_p7, %p582_p9  ;;  %s447_s9 = scalar_lea.vmem %s446_s28, 32 }
  0x37   : > { %243 = vadd.xlane.f32.xlu0 %v217_v3  ;;  %p448_p13 = scmp.lt.s32.totalorder %s271_s22, %s446_s28  ;;  %p449_p0 = scmp.lt.s32.totalorder %s447_s9, %s441_s26 }
  0x38   : > { %p444_p10 = pneg %p443_p8 }
  0x39   : > { %p450_p1 = por %p449_p0, %p448_p13 }
  0x3b   : > { %p451_p2 = pnand %p450_p1, %p444_p10 }
  0xc0   : > { %v244_v6 = vpop.xlane.xlu0 %243 }
  0xc1   : > { %v251_v7 = vrot.slane %v244_v6, %v250_v5 }
  0xc3   : > { %254 = vst.msk [vmem:[%s162_s21] sm:$0x1] %vm253_vm1, %v251_v7 }
  0xc4   : > { %454 = shalt.err (!%p451_p2)
}
  0xc5   : > { %s455_s29 = scalar_lea.hbm %s268_s24, 16  ;;  %s459_s3 = scalar_lea.hbm %s654_s1, 32 }
  0xc6   : > { %p456_p3 = scmp.ne.s32.totalorder %s268_s24, %s455_s29  ;;  %p460_p6 = scmp.lt.s32.totalorder %s268_s24, %s654_s1 }
  0xc7   : > { %p461_p7 = scmp.lt.s32.totalorder %s459_s3, %s455_s29 }
  0xc8   : > { %p457_p4 = pnand %p456_p3, %p582_p9 }
  0xc9   : > { %p462_p8 = por %p461_p7, %p460_p6 }
  0xca   : > { %p458_p5 = pneg %p457_p4 }
  0xcc   : > { %p463_p12 = pnand %p462_p8, %p458_p5 }
  0xce   : > { %466 = shalt.err (!%p463_p12)
}
  0xcf   : > { %364 = dma.vmem_to_hbm [thread:$0]  (%p582_p9), %s271_s22, 16, %s268_s24, %s256_s25  }
  0xd0 PF: > { %s282_s12 = sand.u32 1, %s501_s6   ;;  %p659_p10 = scmp.ge.s32.totalorder %s521_s11, 2 }
  0xd1   : > { %s283_s13 = scalar_lea.sflag [#allocation5], %s282_s12 }
  0xd2   : > { %p367_p13 = pnand %p659_p10, %p589_p11 }
  0xd4   : > { %p368_p0 = pneg %p367_p13 }
  0xd6   : > { %496 = dma.done.wait (%p368_p0), %s283_s13, 16  }
  0xd7   : > { %498 = vsyncadd (%p368_p0), %s283_s13, 4294967280  ;;  %s17_s11 = sadd.s32 1, %s521_s11   ;;  %s660_s6 = smov %s505_s7 }
  0xd8   : > { %p14_p1 = scmp.ge.s32.totalorder %s17_s11, 4   ;;  %s661_s7 = smov %s509_s8 }
  0xd9   : > { %s662_s8 = smov %s587_s19  ;;  %s663_s9 = smov %s517_s10 }
  0xda   : > { %s664_s10 = smov %s666_s14  ;;  %16 = sbr.rel (!%p14_p1) target bundleno = 6 (0x6), region = 85 }
  0xdf   :  { %287 = vsyncpa [#allocation4], 1 }
  0xe0   :  { %289 = vsyncpa [#allocation4 + $0x1], 1 }
  0xe1   :  { %290 = vsyncpa [#allocation5], 1 }
  0xe2   :  { %292 = vsyncpa [#allocation5 + $0x1], 1 }

</bundles_post_ra>
